<compile_context>
chip_gen: v6e
topology: v6e:2x2x1
jax: 0.10.0
libtpu: 0.0.40
codegen_flags: <defaults>
</compile_context>

<pallas_src>
import jax
import jax.numpy as jnp
from jax.experimental import pallas as pl
from jax.experimental.pallas import tpu as pltpu


def _rational_kernel(coeffs_ref, x_ref, o_ref):
    # coeffs_ref: SMEM (8,) f32, flattened (4, 2) coefficient matrix (row-major).
    #   coeffs[0, 1] (index 1) is forced to zero in forward(), so its term is
    #   simply omitted here — exact match to .zero_(), even for inf/NaN params.
    # x_ref / o_ref: VMEM (block_rows, lane)
    x = x_ref[...].astype(jnp.float32)

    p3 = coeffs_ref[0]   # coeffs[0, 0]
    p2 = coeffs_ref[2]   # coeffs[1, 0]
    p1 = coeffs_ref[4]   # coeffs[2, 0]
    p0 = coeffs_ref[6]   # coeffs[3, 0]
    q2 = coeffs_ref[3]   # coeffs[1, 1]
    q1 = coeffs_ref[5]   # coeffs[2, 1]
    q0 = coeffs_ref[7]   # coeffs[3, 1]

    # Horner form: fewer VALU ops than the power-basis matmul formulation.
    P = ((p3 * x + p2) * x + p1) * x + p0
    Q = (q2 * x + q1) * x + q0

    # Exact reciprocal keeps the 1e-5 tolerance; the refinement is free filler
    # on HBM-bound v5e/v6e.
    # TODO(synk): on v7x (VALU co-bound) benchmark pl.reciprocal(Q, approx=True)
    # and re-validate tolerance before switching.
    o_ref[...] = (P * pl.reciprocal(Q, approx=False)).astype(o_ref.dtype)


def _round_up(a: int, b: int) -> int:
    return -(-a // b) * b


_SMALL_ROWS = 64                    # <= this many rows: one block, no pipeline
_TARGET_BLOCK_ELEMS = 1 << 20       # ~4 MiB of f32 per buffer


def rational(x: jnp.ndarray, coeffs: jnp.ndarray) -> jnp.ndarray:
    """Apply the Rational activation elementwise to an array of any shape."""
    orig_shape = x.shape
    orig_dtype = x.dtype
    total = int(x.size)

    coeffs_flat = coeffs.astype(jnp.float32).reshape(8)

    # Lane-dense last dim that divides the element count exactly -> no pad and
    # no output slice (both would be full extra HBM passes).
    lane = None
    for cand in (512, 256, 128):
        if total % cand == 0:
            lane = cand
            break

    padded_total = total
    if lane is None:
        # Rare ragged fallback (element count not a multiple of 128): pad once.
        lane = 128
        padded_total = _round_up(total, lane)
        x_flat = jnp.pad(x.reshape(-1), (0, padded_total - total))
        x2d = x_flat.reshape(padded_total // lane, lane)
    else:
        x2d = x.reshape(total // lane, lane)   # free (contiguous) reshape

    rows = padded_total // lane

    if rows <= _SMALL_ROWS:
        # Tiny input: whole array is one block (full-array blocks are exempt
        # from the (8, 128) divisibility rule).
        block_rows = rows
    else:
        # Mid/large input: at least ~8 grid steps so in/out DMAs overlap across
        # iterations, capped at ~4 MiB per buffer.
        max_block_rows = max(8, _TARGET_BLOCK_ELEMS // lane)
        block_rows = min(max_block_rows, _round_up(pl.cdiv(rows, 8), 16))

    num_blocks = pl.cdiv(rows, block_rows)   # ragged last block is masked

    # Triple-buffer the input DMA when the grid is long enough to benefit.
    x_spec_kwargs = {"pipeline_mode": pl.Buffered(3)} if num_blocks >= 4 else {}

    out2d = pl.pallas_call(
        _rational_kernel,
        out_shape=jax.ShapeDtypeStruct((rows, lane), orig_dtype),
        grid_spec=pltpu.PrefetchScalarGridSpec(
            num_scalar_prefetch=1,                 # coeffs -> SMEM, once
            grid=(num_blocks,),
            in_specs=[
                pl.BlockSpec((block_rows, lane), lambda i, c: (i, 0),
                             **x_spec_kwargs),
            ],
            out_specs=pl.BlockSpec((block_rows, lane), lambda i, c: (i, 0)),
        ),
        compiler_params=pltpu.CompilerParams(
            # TODO(synk): verify both v7x TensorCores are engaged; if not,
            # switch this axis to pltpu.CORE_PARALLEL.
            dimension_semantics=("parallel",),
            # 3 input + 2 output buffers of ~4 MiB -> ~20 MiB; raise the scoped
            # limit explicitly so v5e (16 MiB default) is safe, staying well
            # under v7x's 64 MiB physical VMEM.
            vmem_limit_bytes=40 * 1024 * 1024,
        ),
    )(coeffs_flat, x2d)

    if padded_total != total:
        return out2d.reshape(-1)[:total].reshape(orig_shape)
    return out2d.reshape(orig_shape)


def rational_reference(x: jnp.ndarray, coeffs: jnp.ndarray) -> jnp.ndarray:
    """Pure-JAX reference mirroring the PyTorch forward exactly."""
    c = coeffs.at[0, 1].set(0.0)
    exp = jnp.array([3.0, 2.0, 1.0, 0.0], dtype=x.dtype)
    X = jnp.power(x[..., None], exp)
    PQ = X @ c.astype(x.dtype)
    return PQ[..., 0] / PQ[..., 1]


if __name__ == "__main__":
    # Deterministic parameter init, same as Rational.reset_parameters()
    coeffs = jnp.array(
        [[1.1915, 0.0],
         [1.5957, 2.383],
         [0.5, 0.0],
         [0.0218, 1.0]], dtype=jnp.float32)

    key = jax.random.PRNGKey(0)

    # Small NCHW input, as the module's forward implies (elementwise activation).
    x = jax.random.normal(key, (2, 4, 16, 16), dtype=jnp.float32)
    out = jax.block_until_ready(rational(x, coeffs))
    ref = rational_reference(x, coeffs)
    assert out.shape == x.shape and out.dtype == x.dtype
    assert jnp.allclose(out, ref, atol=1e-5, rtol=1e-5), "mismatch vs reference"

    # Also exercise the multi-block pipelined path (rows > 64, Buffered(3)).
    x2 = jax.random.normal(jax.random.PRNGKey(0), (4, 8, 64, 64),
                           dtype=jnp.float32)
    out2 = jax.block_until_ready(rational(x2, coeffs))
    ref2 = rational_reference(x2, coeffs)
    assert out2.shape == x2.shape and out2.dtype == x2.dtype
    assert jnp.allclose(out2, ref2, atol=1e-5, rtol=1e-5), "mismatch (tiled)"

    print("KERNEL_OK")
</pallas_src>

<mosaic_0001>
module attributes {stable_mosaic.version = 11 : i64} {
  func.func @_rational_kernel(%arg0: i32, %arg1: memref<8xf32, #tpu.memory_space<smem>>, %arg2: memref<4x512xf32, #tpu.memory_space<vmem>>, %arg3: memref<4x512xf32, #tpu.memory_space<vmem>>) attributes {dimension_semantics = [#tpu.dimension_semantics<parallel>], iteration_bounds = array<i64: 1>, scalar_prefetch = 1 : i64, scratch_operands = 0 : i64, tpu.core_type = #tpu.core_type<tc>, window_params = [{transform_indices = @transform_0, window_bounds = array<i64: 4, 512>}, {transform_indices = @transform_1, window_bounds = array<i64: 4, 512>}]} {
    %c0 = arith.constant 0 : index
    %c0_0 = arith.constant 0 : index
    %0 = vector.load %arg2[%c0, %c0_0] : memref<4x512xf32, #tpu.memory_space<vmem>>, vector<4x512xf32>
    %c0_1 = arith.constant 0 : index
    %1 = memref.load %arg1[%c0_1] : memref<8xf32, #tpu.memory_space<smem>>
    %c2 = arith.constant 2 : index
    %2 = memref.load %arg1[%c2] : memref<8xf32, #tpu.memory_space<smem>>
    %c4 = arith.constant 4 : index
    %3 = memref.load %arg1[%c4] : memref<8xf32, #tpu.memory_space<smem>>
    %c6 = arith.constant 6 : index
    %4 = memref.load %arg1[%c6] : memref<8xf32, #tpu.memory_space<smem>>
    %c3 = arith.constant 3 : index
    %5 = memref.load %arg1[%c3] : memref<8xf32, #tpu.memory_space<smem>>
    %c5 = arith.constant 5 : index
    %6 = memref.load %arg1[%c5] : memref<8xf32, #tpu.memory_space<smem>>
    %c7 = arith.constant 7 : index
    %7 = memref.load %arg1[%c7] : memref<8xf32, #tpu.memory_space<smem>>
    %8 = vector.broadcast %1 : f32 to vector<4x512xf32>
    %9 = arith.mulf %8, %0 : vector<4x512xf32>
    %10 = vector.broadcast %2 : f32 to vector<4x512xf32>
    %11 = arith.addf %9, %10 : vector<4x512xf32>
    %12 = arith.mulf %11, %0 : vector<4x512xf32>
    %13 = vector.broadcast %3 : f32 to vector<4x512xf32>
    %14 = arith.addf %12, %13 : vector<4x512xf32>
    %15 = arith.mulf %14, %0 : vector<4x512xf32>
    %16 = vector.broadcast %4 : f32 to vector<4x512xf32>
    %17 = arith.addf %15, %16 : vector<4x512xf32>
    %18 = vector.broadcast %5 : f32 to vector<4x512xf32>
    %19 = arith.mulf %18, %0 : vector<4x512xf32>
    %20 = vector.broadcast %6 : f32 to vector<4x512xf32>
    %21 = arith.addf %19, %20 : vector<4x512xf32>
    %22 = arith.mulf %21, %0 : vector<4x512xf32>
    %23 = vector.broadcast %7 : f32 to vector<4x512xf32>
    %24 = arith.addf %22, %23 : vector<4x512xf32>
    %25 = tpu.reciprocal %24 : vector<4x512xf32> -> vector<4x512xf32>
    %26 = arith.mulf %17, %25 : vector<4x512xf32>
    %c0_2 = arith.constant 0 : index
    %c0_3 = arith.constant 0 : index
    %27 = vector.load %arg3[%c0_2, %c0_3] : memref<4x512xf32, #tpu.memory_space<vmem>>, vector<4x512xf32>
    tpu.vector_store %arg3[%c0_2, %c0_3], %26 {strides = array<i32>} : memref<4x512xf32, #tpu.memory_space<vmem>>, vector<4x512xf32>,
    return
  }
  func.func @transform_0(%arg0: i32, %arg1: memref<8xf32, #tpu.memory_space<smem>>) -> (i32, i32) {
    %c0_i32 = arith.constant 0 : i32
    %c0_i32_0 = arith.constant 0 : i32
    return %arg0, %c0_i32 : i32, i32
  }
  func.func @transform_1(%arg0: i32, %arg1: memref<8xf32, #tpu.memory_space<smem>>) -> (i32, i32) {
    %c0_i32 = arith.constant 0 : i32
    %c0_i32_0 = arith.constant 0 : i32
    return %arg0, %c0_i32 : i32, i32
  }
}

</mosaic_0001>

<bundles_post_ra>
// kernel: tpu_custom_call.1
= control target key start
LH: loop header
LB: loop body
LE: loop exit
PB: predicated region body
PF: predicated region fallthrough
CT: control target
= control target key end

     0   :  { %s150_s9 = smov [#allocation3]   ;;  %s177_s0 = inlined_call_operand.hbm [shape: f32[8], index: 0, kind: input, shape index: {}]   ;;  %s178_s1 = inlined_call_operand.hbm [shape: f32[4,512], index: 1, kind: input, shape index: {}]   ;;  %s179_s2 = inlined_call_operand.hbm [shape: f32[4,512], index: 2, kind: output, shape index: {}]  }
   0x1   :  { %8 = dma.hbm_to_smem %s177_s0, 16, %s150_s9, [#allocation2] }
   0x2   :  { %144 = dma.done.wait [#allocation2], 16 }
   0x3   :  { %145 = vsyncadd [#allocation2], 4294967280 }
   0x4   :  { %10 = sfence }
   0x5   :  { %11 = vsyncpa [#allocation5], 0 }
   0x6   :  { %12 = vsyncpa [#allocation6], 0  ;;  %s151_s12 = smov [#allocation4]  }
   0x7   :  { %s19_s13 = sshll.u32 %s151_s12, 4  ;;  %s20_s13 = int_to_ptr.vmem [resolvable:$true] %s19_s13 }
   0x8   :  { %s112_s14 = scalar_lea.vmem %s20_s13, 256  ;;  %p117_p1 = scmp.lt.s32.totalorder %s20_s13, %s20_s13 }
   0x9   :  { %p113_p0 = scmp.ne.s32.totalorder %s20_s13, %s112_s14  ;;  %p118_p2 = scmp.lt.s32.totalorder %s112_s14, %s112_s14 }
   0xb   :  { %p119_p3 = por %p118_p2, %p117_p1 }
   0xd   :  { %p120_p4 = pnand %p119_p3, %p113_p0 }
   0xf   :  { %123 = shalt.err (!%p120_p4)
}
  0x10   :  { %22 = dma.hbm_to_vmem [thread:$0]  %s178_s1, 256, %s20_s13, [#allocation5]  }
  0x11   :  { %146 = dma.done.wait [#allocation5], 256  }
  0x12   :  { %147 = vsyncadd [#allocation5], 4294967040  ;;  %s28_s0 = sld [smem:[#allocation3]]  ;;  %v26_v1 = vld [vmem:[#allocation4] sm:$0xff]  ;;  %v27_v3 = vld [vmem:[#allocation4 + $0x8] sm:$0xff]  ;;  %s152_s22 = smov [#allocation7]  }
  0x13   :  { %s83_s17 = sld [smem:[#allocation3 + $0x2]]  ;;  %s74_s23 = sshll.u32 %s152_s22, 4  ;;  %s75_s23 = int_to_ptr.vmem [resolvable:$true] %s74_s23 }
  0x14   :  { %s86_s18 = sld [smem:[#allocation3 + $0x3]]  ;;  %s124_s24 = scalar_lea.vmem %s75_s23, 256 }
  0x15   :  { %s87_s19 = sld [smem:[#allocation3 + $0x5]]  ;;  %p125_p5 = scmp.ne.s32.totalorder %s75_s23, %s124_s24 }
  0x16   :  { %s88_s20 = sld [smem:[#allocation3 + $0x7]]  ;;  %p129_p6 = scmp.lt.s32.totalorder %s75_s23, %s75_s23 }
  0x17   :  { %s84_s21 = sld [smem:[#allocation3 + $0x4]]  ;;  %p130_p7 = scmp.lt.s32.totalorder %s124_s24, %s124_s24 }
  0x18   :  { %v35_v0 = vstv %s28_s0  ;;  %s85_s1 = sld [smem:[#allocation3 + $0x6]] }
  0x19   :  { %v36_v2 = vmul.f32 %v35_v0, %v26_v1  ;;  %v38_v4 = vstv %s83_s17  ;;  %v37_v6 = vmul.f32 %v35_v0, %v27_v3  ;;  %p131_p8 = por %p130_p7, %p129_p6 }
  0x1a   :  { %v51_v5 = vstv %s86_s18 }
  0x1b   :  { %v52_v7 = vmul.f32 %v51_v5, %v26_v1  ;;  %v54_v8 = vstv %s87_s19  ;;  %v53_v9 = vmul.f32 %v51_v5, %v27_v3  ;;  %v39_v10 = vadd.f32 %v38_v4, %v36_v2  ;;  %p132_p9 = pnand %p131_p8, %p125_p5 }
  0x1c   :  { %v59_v12 = vstv %s88_s20  ;;  %v40_v13 = vadd.f32 %v38_v4, %v37_v6 }
  0x1d   :  { %v55_v11 = vadd.f32 %v54_v8, %v52_v7  ;;  %v56_v14 = vadd.f32 %v54_v8, %v53_v9  ;;  %v41_v17 = vmul.f32 %v39_v10, %v26_v1  ;;  %v43_v19 = vstv %s84_s21 }
  0x1e   :  { %v42_v20 = vmul.f32 %v40_v13, %v27_v3  ;;  %v48_v25 = vstv %s85_s1 }
  0x1f   :  { %v57_v15 = vmul.f32 %v55_v11, %v26_v1  ;;  %v58_v16 = vmul.f32 %v56_v14, %v27_v3  ;;  %v44_v22 = vadd.f32 %v43_v19, %v41_v17 }
  0x20   :  { %v45_v23 = vadd.f32 %v43_v19, %v42_v20 }
  0x21   :  { %v60_v18 = vadd.f32 %v59_v12, %v57_v15  ;;  %v61_v21 = vadd.f32 %v59_v12, %v58_v16  ;;  %v46_v24 = vmul.f32 %v44_v22, %v26_v1 }
  0x22   :  { %v47_v26 = vmul.f32 %v45_v23, %v27_v3 }
  0x23   :  { %92 = vrcp.f32 %v60_v18  ;;  %v49_v27 = vadd.f32 %v48_v25, %v46_v24 }
  0x24   :  { %94 = vrcp.f32 %v61_v21  ;;  %v50_v28 = vadd.f32 %v48_v25, %v47_v26 }
  0x30   :  { %v93_v29 = vpop.eup %92 }
  0x31   :  { %v95_v30 = vpop.eup %94  ;;  %v64_v31 = vmul.f32 %v93_v29, %v49_v27 }
  0x32   :  { %v65_v32 = vmul.f32 %v95_v30, %v50_v28 }
  0x33   :  { %66 = vst [vmem:[#allocation7] sm:$0xff] %v64_v31 }
  0x34   :  { %67 = vst [vmem:[#allocation7 + $0x8] sm:$0xff] %v65_v32 }
  0x35   :  { %135 = shalt.err (!%p132_p9)
}
  0x36   :  { %77 = dma.vmem_to_hbm [thread:$0]  %s75_s23, 256, %s179_s2, [#allocation6]  }
  0x37   :  { %148 = dma.done.wait [#allocation6], 256  }
  0x38   :  { %149 = vsyncadd [#allocation6], 4294967040 }
  0x39   :  { %81 = vsyncpa [#allocation5], 1 }
  0x3a   :  { %82 = vsyncpa [#allocation6], 1 }

</bundles_post_ra>
